<compile_context>
chip_gen: v7x
topology: tpu7x:2x2x1
jax: 0.10.0
libtpu: 0.0.40
codegen_flags: <defaults>
</compile_context>

<pallas_src>
import jax
import jax.numpy as jnp
from jax.experimental import pallas as pl
from jax.experimental.pallas import tpu as pltpu


def _vn_maxpool_kernel(w_ref, x_ref, o_ref):
    w = w_ref[...]                                   # (C, C)
    bt, C, three_n = x_ref.shape
    N = three_n // 3

    # Hoisted: reused by every batch element (broadcasts are not CSE'd).
    iota = jax.lax.broadcasted_iota(jnp.int32, (C, N), 1)

    for b in range(bt):                              # small static unrolled loop
        xb = x_ref[b]                                # (C, 3N) lane-aligned view

        # Single fused MXU matmul over all three vector components.
        d = jnp.dot(w, xb, preferred_element_type=jnp.float32)     # (C, 3N)
        prod = xb.astype(jnp.float32) * d                          # (C, 3N)
        # dot[c, n] = sum_v prod[c, v*N + n]; lane-aligned slices, no relayout.
        dot = prod[:, 0:N] + prod[:, N:2 * N] + prod[:, 2 * N:3 * N]  # (C, N)

        # First-occurrence argmax over the sample axis (torch.max semantics).
        # NOTE: NaN inputs would silently yield a zero row (torch would return
        # the NaN-position vector); fine for finite inputs.
        maxv = jnp.max(dot, axis=-1, keepdims=True)                   # (C, 1)
        idx = jnp.min(jnp.where(dot == maxv, iota, N),
                      axis=-1, keepdims=True)                         # (C, 1)
        onehot = (iota == idx).astype(jnp.float32)                    # (C, N)

        # Gather the winning 3-vector per channel (one-hot weighted sums),
        # then emit a lane-dense (3, C) slab for this batch element.
        cols = [
            jnp.sum(xb[:, v * N:(v + 1) * N].astype(jnp.float32) * onehot,
                    axis=-1, keepdims=True)                           # (C, 1)
            for v in range(3)
        ]
        xmax_c3 = jnp.concatenate(cols, axis=-1)                      # (C, 3)
        o_ref[b] = xmax_c3.T.astype(o_ref.dtype)                      # (3, C)


def _choose_batch_tile(B, C, N, itemsize, target_bytes=2 << 20, max_bt=8):
    """How many batch elements to process per grid step."""
    per_b = C * 3 * N * itemsize
    bt = max(1, min(B, max_bt, target_bytes // max(per_b, 1)))
    if B >= 2:
        # Keep at least two grid steps so v7x's second TensorCore has work.
        bt = min(bt, max(1, B // 2))
    while B % bt:                       # use a divisor of B (no padded blocks)
        bt -= 1
    return bt


def vn_max_pool(x, w, *, batch_tile=None):
    """x: (B, C, 3, N), w: (C, C)  ->  (B, C, 3)."""
    B, C, V, N = x.shape
    assert V == 3 and w.shape == (C, C)

    bt = batch_tile or _choose_batch_tile(B, C, N, x.dtype.itemsize)
    assert B % bt == 0

    # Free reshape: the last two dims (3, N) are contiguous in HBM.
    x2 = x.reshape(B, C, 3 * N)

    out = pl.pallas_call(
        _vn_maxpool_kernel,
        out_shape=jax.ShapeDtypeStruct((B, 3, C), x.dtype),
        grid=(B // bt,),
        in_specs=[
            pl.BlockSpec((C, C), lambda i: (0, 0)),
            pl.BlockSpec((bt, C, 3 * N), lambda i: (i, 0, 0)),
        ],
        out_specs=pl.BlockSpec((bt, 3, C), lambda i: (i, 0, 0)),
        compiler_params=pltpu.CompilerParams(
            dimension_semantics=("parallel",),
            vmem_limit_bytes=64 * 1024 * 1024,
        ),
    )(w, x2)

    # Lane-dense (B, 3, C) kernel output -> module's (B, C, 3).
    return jnp.swapaxes(out, 1, 2)


def vn_max_pool_ref(x, w):
    # Pure-JAX reference mirroring the PyTorch forward.
    d = jnp.einsum("oc,bcvn->bovn", w, x)
    dotprod = (x * d).sum(axis=2)                          # (B, C, N)
    idx = jnp.argmax(dotprod, axis=-1)                     # (B, C)
    x_max = jnp.take_along_axis(x, idx[:, :, None, None], axis=-1)[..., 0]
    return x_max                                           # (B, C, 3)


if __name__ == "__main__":
    B, C, V, N = 4, 32, 3, 128
    key = jax.random.PRNGKey(0)
    kx, kw = jax.random.split(key)

    x = jax.random.normal(kx, (B, C, V, N), dtype=jnp.float32)
    # nn.Linear(C, C, bias=False) default init: U(-1/sqrt(C), 1/sqrt(C)), shape (out, in)
    bound = 1.0 / jnp.sqrt(jnp.float32(C))
    w = jax.random.uniform(kw, (C, C), dtype=jnp.float32, minval=-bound, maxval=bound)

    out = vn_max_pool(x, w)
    out = jax.block_until_ready(out)

    ref = vn_max_pool_ref(x, w)
    assert out.shape == (B, C, V)
    assert jnp.allclose(out, ref, atol=1e-5, rtol=1e-5), "mismatch vs reference"

    print("KERNEL_OK")
</pallas_src>

<mosaic_0001>
module attributes {stable_mosaic.version = 11 : i64} {
  func.func @_vn_maxpool_kernel(%arg0: i32, %arg1: memref<32x32xf32, #tpu.memory_space<vmem>>, %arg2: memref<2x32x384xf32, #tpu.memory_space<vmem>>, %arg3: memref<2x3x32xf32, #tpu.memory_space<vmem>>) attributes {dimension_semantics = [#tpu.dimension_semantics<parallel>], iteration_bounds = array<i64: 2>, scalar_prefetch = 0 : i64, scratch_operands = 0 : i64, tpu.core_type = #tpu.core_type<tc>, window_params = [{pipeline_mode = #tpu.pipeline_mode<synchronous>, transform_indices = @transform_0, window_bounds = array<i64: 32, 32>}, {transform_indices = @transform_1, window_bounds = array<i64: 2, 32, 384>}, {transform_indices = @transform_2, window_bounds = array<i64: 2, 3, 32>}]} {
    %c0 = arith.constant 0 : index
    %c0_0 = arith.constant 0 : index
    %0 = vector.load %arg1[%c0, %c0_0] : memref<32x32xf32, #tpu.memory_space<vmem>>, vector<32x32xf32>
    %1 = tpu.iota {dimensions = array<i32: 1>} : vector<32x128xi32>
    %c0_1 = arith.constant 0 : index
    %c0_2 = arith.constant 0 : index
    %c0_3 = arith.constant 0 : index
    %2 = vector.load %arg2[%c0_1, %c0_2, %c0_3] : memref<2x32x384xf32, #tpu.memory_space<vmem>>, vector<1x32x384xf32>
    %3 = vector.shape_cast %2 : vector<1x32x384xf32> to vector<32x384xf32>
    %cst = arith.constant dense<0.000000e+00> : vector<32x384xf32>
    %4 = tpu.matmul %0, %3, %cst {dimension_numbers = #tpu.dot_dimension_numbers<[1], [0], [0], [1], [0, 0, 1, 1], [], []>} : vector<32x32xf32>, vector<32x384xf32>, vector<32x384xf32> -> vector<32x384xf32>
    %5 = arith.mulf %3, %4 : vector<32x384xf32>
    %6 = vector.extract_strided_slice %5 {offsets = [0, 0], sizes = [32, 128], strides = [1, 1]} : vector<32x384xf32> to vector<32x128xf32>
    %7 = vector.extract_strided_slice %5 {offsets = [0, 128], sizes = [32, 128], strides = [1, 1]} : vector<32x384xf32> to vector<32x128xf32>
    %8 = arith.addf %6, %7 : vector<32x128xf32>
    %9 = vector.extract_strided_slice %5 {offsets = [0, 256], sizes = [32, 128], strides = [1, 1]} : vector<32x384xf32> to vector<32x128xf32>
    %10 = arith.addf %8, %9 : vector<32x128xf32>
    %cst_4 = arith.constant dense<0xFF800000> : vector<32xf32>
    %11 = vector.multi_reduction <maximumf>, %10, %cst_4 [1] : vector<32x128xf32> to vector<32xf32>
    %12 = vector.shape_cast %11 : vector<32xf32> to vector<32x1xf32>
    %13 = vector.broadcast %12 : vector<32x1xf32> to vector<32x128xf32>
    %14 = arith.cmpf oeq, %10, %13 : vector<32x128xf32>
    %c128_i32 = arith.constant 128 : i32
    %15 = vector.broadcast %c128_i32 : i32 to vector<32x128xi32>
    %16 = arith.select %14, %1, %15 : vector<32x128xi1>, vector<32x128xi32>
    %cst_5 = arith.constant dense<2147483647> : vector<32xi32>
    %17 = vector.multi_reduction <minsi>, %16, %cst_5 [1] : vector<32x128xi32> to vector<32xi32>
    %18 = vector.shape_cast %17 : vector<32xi32> to vector<32x1xi32>
    %19 = vector.broadcast %18 : vector<32x1xi32> to vector<32x128xi32>
    %20 = arith.cmpi eq, %1, %19 : vector<32x128xi32>
    %21 = arith.extui %20 : vector<32x128xi1> to vector<32x128xi32>
    %22 = arith.sitofp %21 : vector<32x128xi32> to vector<32x128xf32>
    %23 = vector.extract_strided_slice %3 {offsets = [0, 0], sizes = [32, 128], strides = [1, 1]} : vector<32x384xf32> to vector<32x128xf32>
    %24 = arith.mulf %23, %22 : vector<32x128xf32>
    %cst_6 = arith.constant dense<0.000000e+00> : vector<32xf32>
    %25 = vector.multi_reduction <add>, %24, %cst_6 [1] : vector<32x128xf32> to vector<32xf32>
    %26 = vector.shape_cast %25 : vector<32xf32> to vector<32x1xf32>
    %27 = vector.extract_strided_slice %3 {offsets = [0, 128], sizes = [32, 128], strides = [1, 1]} : vector<32x384xf32> to vector<32x128xf32>
    %28 = arith.mulf %27, %22 : vector<32x128xf32>
    %cst_7 = arith.constant dense<0.000000e+00> : vector<32xf32>
    %29 = vector.multi_reduction <add>, %28, %cst_7 [1] : vector<32x128xf32> to vector<32xf32>
    %30 = vector.shape_cast %29 : vector<32xf32> to vector<32x1xf32>
    %31 = vector.extract_strided_slice %3 {offsets = [0, 256], sizes = [32, 128], strides = [1, 1]} : vector<32x384xf32> to vector<32x128xf32>
    %32 = arith.mulf %31, %22 : vector<32x128xf32>
    %cst_8 = arith.constant dense<0.000000e+00> : vector<32xf32>
    %33 = vector.multi_reduction <add>, %32, %cst_8 [1] : vector<32x128xf32> to vector<32xf32>
    %34 = vector.shape_cast %33 : vector<32xf32> to vector<32x1xf32>
    %35 = tpu.concatenate %26, %30, %34 in 1 : vector<32x1xf32>, vector<32x1xf32>, vector<32x1xf32> -> vector<32x3xf32>
    %36 = tpu.transpose %35, [1, 0] : vector<32x3xf32> -> vector<3x32xf32>
    %c0_9 = arith.constant 0 : index
    %c0_10 = arith.constant 0 : index
    %c0_11 = arith.constant 0 : index
    %37 = vector.load %arg3[%c0_9, %c0_10, %c0_11] : memref<2x3x32xf32, #tpu.memory_space<vmem>>, vector<1x3x32xf32>
    %38 = vector.shape_cast %37 : vector<1x3x32xf32> to vector<3x32xf32>
    %39 = vector.shape_cast %36 : vector<3x32xf32> to vector<1x3x32xf32>
    tpu.vector_store %arg3[%c0_9, %c0_10, %c0_11], %39 {strides = array<i32>} : memref<2x3x32xf32, #tpu.memory_space<vmem>>, vector<1x3x32xf32>,
    %c1 = arith.constant 1 : index
    %c0_12 = arith.constant 0 : index
    %c0_13 = arith.constant 0 : index
    %40 = vector.load %arg2[%c1, %c0_12, %c0_13] : memref<2x32x384xf32, #tpu.memory_space<vmem>>, vector<1x32x384xf32>
    %41 = vector.shape_cast %40 : vector<1x32x384xf32> to vector<32x384xf32>
    %cst_14 = arith.constant dense<0.000000e+00> : vector<32x384xf32>
    %42 = tpu.matmul %0, %41, %cst_14 {dimension_numbers = #tpu.dot_dimension_numbers<[1], [0], [0], [1], [0, 0, 1, 1], [], []>} : vector<32x32xf32>, vector<32x384xf32>, vector<32x384xf32> -> vector<32x384xf32>
    %43 = arith.mulf %41, %42 : vector<32x384xf32>
    %44 = vector.extract_strided_slice %43 {offsets = [0, 0], sizes = [32, 128], strides = [1, 1]} : vector<32x384xf32> to vector<32x128xf32>
    %45 = vector.extract_strided_slice %43 {offsets = [0, 128], sizes = [32, 128], strides = [1, 1]} : vector<32x384xf32> to vector<32x128xf32>
    %46 = arith.addf %44, %45 : vector<32x128xf32>
    %47 = vector.extract_strided_slice %43 {offsets = [0, 256], sizes = [32, 128], strides = [1, 1]} : vector<32x384xf32> to vector<32x128xf32>
    %48 = arith.addf %46, %47 : vector<32x128xf32>
    %cst_15 = arith.constant dense<0xFF800000> : vector<32xf32>
    %49 = vector.multi_reduction <maximumf>, %48, %cst_15 [1] : vector<32x128xf32> to vector<32xf32>
    %50 = vector.shape_cast %49 : vector<32xf32> to vector<32x1xf32>
    %51 = vector.broadcast %50 : vector<32x1xf32> to vector<32x128xf32>
    %52 = arith.cmpf oeq, %48, %51 : vector<32x128xf32>
    %c128_i32_16 = arith.constant 128 : i32
    %53 = vector.broadcast %c128_i32_16 : i32 to vector<32x128xi32>
    %54 = arith.select %52, %1, %53 : vector<32x128xi1>, vector<32x128xi32>
    %cst_17 = arith.constant dense<2147483647> : vector<32xi32>
    %55 = vector.multi_reduction <minsi>, %54, %cst_17 [1] : vector<32x128xi32> to vector<32xi32>
    %56 = vector.shape_cast %55 : vector<32xi32> to vector<32x1xi32>
    %57 = vector.broadcast %56 : vector<32x1xi32> to vector<32x128xi32>
    %58 = arith.cmpi eq, %1, %57 : vector<32x128xi32>
    %59 = arith.extui %58 : vector<32x128xi1> to vector<32x128xi32>
    %60 = arith.sitofp %59 : vector<32x128xi32> to vector<32x128xf32>
    %61 = vector.extract_strided_slice %41 {offsets = [0, 0], sizes = [32, 128], strides = [1, 1]} : vector<32x384xf32> to vector<32x128xf32>
    %62 = arith.mulf %61, %60 : vector<32x128xf32>
    %cst_18 = arith.constant dense<0.000000e+00> : vector<32xf32>
    %63 = vector.multi_reduction <add>, %62, %cst_18 [1] : vector<32x128xf32> to vector<32xf32>
    %64 = vector.shape_cast %63 : vector<32xf32> to vector<32x1xf32>
    %65 = vector.extract_strided_slice %41 {offsets = [0, 128], sizes = [32, 128], strides = [1, 1]} : vector<32x384xf32> to vector<32x128xf32>
    %66 = arith.mulf %65, %60 : vector<32x128xf32>
    %cst_19 = arith.constant dense<0.000000e+00> : vector<32xf32>
    %67 = vector.multi_reduction <add>, %66, %cst_19 [1] : vector<32x128xf32> to vector<32xf32>
    %68 = vector.shape_cast %67 : vector<32xf32> to vector<32x1xf32>
    %69 = vector.extract_strided_slice %41 {offsets = [0, 256], sizes = [32, 128], strides = [1, 1]} : vector<32x384xf32> to vector<32x128xf32>
    %70 = arith.mulf %69, %60 : vector<32x128xf32>
    %cst_20 = arith.constant dense<0.000000e+00> : vector<32xf32>
    %71 = vector.multi_reduction <add>, %70, %cst_20 [1] : vector<32x128xf32> to vector<32xf32>
    %72 = vector.shape_cast %71 : vector<32xf32> to vector<32x1xf32>
    %73 = tpu.concatenate %64, %68, %72 in 1 : vector<32x1xf32>, vector<32x1xf32>, vector<32x1xf32> -> vector<32x3xf32>
    %74 = tpu.transpose %73, [1, 0] : vector<32x3xf32> -> vector<3x32xf32>
    %c1_21 = arith.constant 1 : index
    %c0_22 = arith.constant 0 : index
    %c0_23 = arith.constant 0 : index
    %75 = vector.load %arg3[%c1_21, %c0_22, %c0_23] : memref<2x3x32xf32, #tpu.memory_space<vmem>>, vector<1x3x32xf32>
    %76 = vector.shape_cast %75 : vector<1x3x32xf32> to vector<3x32xf32>
    %77 = vector.shape_cast %74 : vector<3x32xf32> to vector<1x3x32xf32>
    tpu.vector_store %arg3[%c1_21, %c0_22, %c0_23], %77 {strides = array<i32>} : memref<2x3x32xf32, #tpu.memory_space<vmem>>, vector<1x3x32xf32>,
    return
  }
  func.func @transform_0(%arg0: i32) -> (i32, i32) {
    %c0_i32 = arith.constant 0 : i32
    %c0_i32_0 = arith.constant 0 : i32
    %c0_i32_1 = arith.constant 0 : i32
    return %c0_i32, %c0_i32_0 : i32, i32
  }
  func.func @transform_1(%arg0: i32) -> (i32, i32, i32) {
    %c0_i32 = arith.constant 0 : i32
    %c0_i32_0 = arith.constant 0 : i32
    %c0_i32_1 = arith.constant 0 : i32
    return %arg0, %c0_i32, %c0_i32_0 : i32, i32, i32
  }
  func.func @transform_2(%arg0: i32) -> (i32, i32, i32) {
    %c0_i32 = arith.constant 0 : i32
    %c0_i32_0 = arith.constant 0 : i32
    %c0_i32_1 = arith.constant 0 : i32
    return %arg0, %c0_i32, %c0_i32_0 : i32, i32, i32
  }
}

</mosaic_0001>

<bundles_post_ra>
// kernel: tpu_custom_call.1
= control target key start
LH: loop header
LB: loop body
LE: loop exit
PB: predicated region body
PF: predicated region fallthrough
CT: control target
= control target key end

     0   :  { %7 = vsyncpa [#allocation3], 0  ;;  %s1822_s0 = inlined_call_operand.hbm [shape: f32[32,32], index: 0, kind: input, shape index: {}]   ;;  %s1823_s1 = inlined_call_operand.hbm [shape: f32[4,32,384], index: 1, kind: input, shape index: {}]   ;;  %s1824_s2 = inlined_call_operand.hbm [shape: f32[4,3,32], index: 2, kind: output, shape index: {}]  }
   0x1   :  { %8 = vsyncpa [#allocation6], 0 }
   0x2   :  { %10 = vsyncpa [#allocation6 + $0x1], 0 }
   0x3   :  { %11 = vsyncpa [#allocation4], 0 }
   0x4   :  { %13 = vsyncpa [#allocation4 + $0x1], 0  ;;  %s1388_s9 = smov 0   ;;  %s1390_s10 = smov 0  }
   0x5   :  { %s1392_s11 = smov 0   ;;  %s1394_s12 = smov 0  }
   0x6 LB: > { %s1409_s13 = sadd.s32 4294967295, %s1361_s12   ;;  %s1037_s14 = sadd.s32 4294967294, %s1361_s12   ;;  %s1361_s12 = sphi %s1394_s12, %s1844_s12   ;;  %s1357_s11 = sphi %s1392_s11, %s1843_s11   ;;  %s1353_s10 = sphi %s1390_s10, %s1842_s10   ;;  %s1349_s9 = sphi %s1388_s9, %s1841_s9  }
   0x7   : > { %p60_p0 = scmp.ne.s32.totalorder %s1353_s10, %s1349_s9  ;;  %p1825_p1 = scmp.eq.s32.totalorder %s1409_s13, 0 }
   0x8   : > { %p90_p3 = scmp.eq.s32.totalorder %s1037_s14, 1  ;;  %p1038_p5 = scmp.ge.s32.totalorder %s1361_s12, 1 }
   0x9   : > { %p1418_p4 = por %p1825_p1, %p60_p0  ;;  %p97_p7 = scmp.lt.s32.totalorder %s1361_s12, 3 }
   0xa   : > { %p1423_p6 = por %p90_p3, %p60_p0  ;;  %s1363_s18 = smov [#allocation2]  }
   0xb   : > { %s1828_s15 = scalar_select %p1418_p4, 1, 0 }
   0xc   : > { %s1829_s16 = scalar_select %p1423_p6, 1, 0 }
   0xd   : > { %p1428_p8 = pnand %p1038_p5, %p97_p7  ;;  %s109_s19 = sshll.u32 %s1363_s18, 4  ;;  %s1432_s19 = int_to_ptr.vmem [resolvable:$true] %s109_s19 }
   0xe   : > { %s1444_s21 = sadd.s32 1, %s1361_s12   ;;  %s47_s22 = sadd.s32 1, %s1357_s11 }
   0xf   : > { %s1830_s17 = scalar_select %p1428_p8, 1, 0 }
  0x10   : > { %p1177_p9 = pneg %p1428_p8  ;;  %s44_s23 = ssub.s32 %s1361_s12, %s1444_s21 }
  0x11   : > { %s1233_s26 = scalar_lea.hbm %s1822_s0, 512 }
  0x12   : > { %p1439_p11 = pnand %p1177_p9, %p1825_p1  ;;  %p1234_p12 = scmp.ne.s32.totalorder %s1822_s0, %s1233_s26 }
  0x13   : > { %p1240_p5 = scmp.lt.u32.totalorder %s1233_s26, %s1822_s0 }
  0x14   : > { %p1235_p13 = pneg %p1439_p11 }
  0x16   : > { %p1236_p0 = pnand %p1235_p13, %p1234_p12 }
  0x18   : > { %p1237_p3 = pneg %p1236_p0 }
  0x1a   : > { %p1242_p7 = pnand %p1240_p5, %p1237_p3 }
  0x1c   : > { %1245 = shalt.err (!%p1242_p7)
}
  0x1d   : > { %s1246_s3 = scalar_lea.vmem %s1432_s19, 512  ;;  %p1254_p2 = scmp.lt.s32.totalorder %s1432_s19, %s1432_s19 }
  0x1e   : > { %p1247_p9 = scmp.ne.s32.totalorder %s1432_s19, %s1246_s3  ;;  %p1255_p6 = scmp.lt.s32.totalorder %s1246_s3, %s1246_s3 }
  0x20   : > { %p1249_p10 = pnand %p1247_p9, %p1235_p13  ;;  %p1256_p4 = por %p1255_p6, %p1254_p2 }
  0x22   : > { %p1250_p1 = pneg %p1249_p10 }
  0x24   : > { %p1257_p8 = pnand %p1256_p4, %p1250_p1 }
  0x26   : > { %1260 = shalt.err (!%p1257_p8)
}
  0x27   : > { %s1364_s4 = smov 128   ;;  %s1365_s5 = smov 8  }
  0x28   : > { %1180 = dma.hbm_to_vmem [thread:$0]  (!%p1439_p11), %s1822_s0, 512, %s1432_s19, [#allocation3], %s1364_s4, %s1364_s4, %s1365_s5  }
  0x29   : > { %p45_p2 = scmp.eq.s32.totalorder %s44_s23, 0  ;;  %p54_p1 = scmp.ne.s32.totalorder %s1357_s11, %s1353_s10 }
  0x2a   : > { %p55_p4 = scmp.eq.s32.totalorder %s1361_s12, 0  ;;  %p1190_p6 = scmp.lt.s32.totalorder %s1361_s12, 2 }
  0x2b   : > { %s1475_s8 = scalar_select %p45_p2, %s1357_s11, %s47_s22  }
  0x2c   : > { %p56_p8 = por %p55_p4, %p54_p1  ;;  %p1832_p10 = scmp.eq.s32.totalorder %s1409_s13, 1 }
  0x2d   : > { %s123_s18 = sand.u32 1, %s1357_s11   ;;  %s1167_s24 = smul.u32 3072, %s1361_s12 }
  0x2e   : > { %p1479_p12 = por %p1832_p10, %p54_p1  ;;  %s1166_s25 = smul.u32 192, %s123_s18 }
  0x2f   : > { %s1488_s27 = scalar_lea.hbm %s1823_s1, %s1167_s24  ;;  %p1490_p11 = pnand %p1190_p6, %p56_p8 }
  0x30   : > { %s127_s22 = scalar_lea.vmem [#allocation5], %s1166_s25  ;;  %s1496_s28 = scalar_lea.sflag [#allocation6], %s123_s18 }
  0x31   : > { %s135_s23 = sshll.u32 %s127_s22, 4  ;;  %s1261_s29 = scalar_lea.hbm %s1488_s27, 3072  ;;  %s1494_s23 = int_to_ptr.vmem [resolvable:$true] %s135_s23 }
  0x32   : > { %p1262_p13 = scmp.ne.s32.totalorder %s1488_s27, %s1261_s29  ;;  %p1263_p0 = pneg %p1490_p11 }
  0x33   : > { %s1266_s4 = scalar_lea.hbm %s1823_s1, 6144  ;;  %p1267_p7 = scmp.lt.u32.totalorder %s1488_s27, %s1823_s1 }
  0x34   : > { %p1264_p3 = pnand %p1263_p0, %p1262_p13  ;;  %p1268_p9 = scmp.lt.u32.totalorder %s1266_s4, %s1261_s29 }
  0x35   : > { %p1270_p1 = scmp.lt.u32.totalorder %s1261_s29, %s1488_s27 }
  0x36   : > { %p1265_p5 = pneg %p1264_p3  ;;  %p1269_p2 = por %p1268_p9, %p1267_p7 }
  0x38   : > { %p1271_p4 = por %p1270_p1, %p1269_p2 }
  0x3a   : > { %p1272_p6 = pnand %p1271_p4, %p1265_p5 }
  0x3c   : > { %1275 = shalt.err (!%p1272_p6)
}
  0x3d   : > { %s1276_s7 = scalar_lea.vmem %s1494_s23, 3072  ;;  %s1366_s18 = smov [#allocation5]  }
  0x3e   : > { %p1277_p8 = scmp.ne.s32.totalorder %s1494_s23, %s1276_s7  ;;  %s1281_s24 = sshll.u32 %s1366_s18, 4  ;;  %s1282_s24 = int_to_ptr.vmem [resolvable:$false] %s1281_s24 }
  0x3f   : > { %s1283_s25 = scalar_lea.vmem %s1282_s24, 6144  ;;  %p1284_p3 = scmp.lt.s32.totalorder %s1494_s23, %s1282_s24 }
  0x40   : > { %p1279_p10 = pnand %p1277_p8, %p1263_p0  ;;  %p1285_p7 = scmp.lt.s32.totalorder %s1283_s25, %s1276_s7 }
  0x42   : > { %p1280_p13 = pneg %p1279_p10  ;;  %p1286_p9 = por %p1285_p7, %p1284_p3 }
  0x44   : > { %p1287_p2 = pnand %p1286_p9, %p1280_p13 }
  0x46   : > { %1290 = shalt.err (!%p1287_p2)
}
  0x47   : > { %s1367_s20 = smov 384   ;;  %s1368_s26 = smov 24  }
  0x48   : > { %1184 = dma.hbm_to_vmem [thread:$0]  (!%p1490_p11), %s1488_s27, 3072, %s1494_s23, %s1496_s28, %s1367_s20, %s1367_s20, %s1368_s26  }
  0x49   : > { %p1835_p0 = scmp.ne.s32.totalorder %s1830_s17, 0 }
  0x4a   : > { %p1836_p5 = scmp.eq.s32.totalorder (!%p1835_p0), %s1409_s13, 0 }
  0x4b   : > { %147 = sbr.rel (%p1835_p0) target bundleno = 1089 (0x441), region = 28 }
  0x52   : > { %1336 = dma.done.wait (%p1836_p5), [#allocation3], 512   ;;  %p1837_p1 = pmov %p1836_p5 }
  0x53   : > { %s1531_s22 = sand.u32 1, %s1353_s10   ;;  %p1838_p11 = scmp.ne.s32.totalorder %s1828_s15, 0 }
  0x54   : > { %1338 = vsyncadd (%p1837_p1), [#allocation3], 4294966784  ;;  %s1168_s29 = smul.u32 192, %s1531_s22  ;;  %s154_s30 = scalar_lea.sflag [#allocation6], %s1531_s22 }
  0x56   : > { %s1535_s3 = scalar_lea.vmem [#allocation5], %s1168_s29 }
  0x57   : > { %1340 = dma.done.wait (%p1838_p11), %s154_s30, 3072  }
  0x58   : > { %1342 = vsyncadd (%p1838_p11), %s154_s30, 4294964224  ;;  %v1369_v0 = vmov 0.0   ;;  %v1543_v1 = vld [vmem:[%s1535_s3 + $0x8] sm:$0xff]  ;;  %v1546_v2 = vld [vmem:[%s1535_s3 + $0x20] sm:$0xff]  ;;  %vm198_vm0 = vcmask 261120   ;;  %s1046_s15 = sshll.u32 %s1531_s22, 3 }
  0x59   : > { %275 = vmatprep.mubr.f32.mxu0 %v1369_v0  ;;  %v1549_v3 = vld [vmem:[%s1535_s3] sm:$0xff]  ;;  %v1134_v4 = vpack.c.bf16 %v1546_v2, %v1543_v1  ;;  %v1554_v5 = vld [vmem:[%s1535_s3 + $0x18] sm:$0xff]  ;;  %v1557_v6 = vld [vmem:[%s1535_s3 + $0x10] sm:$0xff]  ;;  %s177_s17 = scalar_lea.vmem [#allocation7], %s1046_s15  ;;  %s1089_s19 = sshll.u32 %s1409_s13, 7 }
  0x5a   : > { %v1560_v7 = vld [vmem:[%s1535_s3 + $0x28] sm:$0xff]  ;;  %v1136_v8 = vpack.c.bf16 %v1554_v5, %v1549_v3  ;;  %v1567_v10 = vld [vmem:[%s1535_s3 + $0x38] sm:$0xff]  ;;  %v1570_v11 = vld [vmem:[%s1535_s3 + $0x50] sm:$0xff]  ;;  %s952_s27 = sshll.u32 %s177_s17, 4  ;;  %s1778_s4 = scalar_lea.hbm %s1824_s2, %s1089_s19  ;;  %s1773_s27 = int_to_ptr.vmem [resolvable:$true] %s952_s27 }
  0x5b   : > { %v1142_v9 = vpack.c.bf16 %v1560_v7, %v1557_v6  ;;  %v1573_v12 = vld [vmem:[%s1535_s3 + $0x30] sm:$0xff]  ;;  %1135 = vmatprep.subr.bf16.mxu0 %v1134_v4  ;;  %v1138_v13 = vpack.c.bf16 %v1570_v11, %v1567_v10  ;;  %v1578_v14 = vld [vmem:[%s1535_s3 + $0x48] sm:$0xff]  ;;  %v1581_v15 = vld [vmem:[%s1535_s3 + $0x40] sm:$0xff]  ;;  %s939_s5 = scalar_lea.sflag [#allocation4], %s1531_s22  ;;  %s1291_s6 = scalar_lea.vmem %s1773_s27, 128 }
  0x5c   : > { %v1584_v16 = vld [vmem:[%s1535_s3 + $0x58] sm:$0xff]  ;;  %1137 = vmatpush1.bf16.msra.mxu0 %v1136_v8  ;;  %v1140_v17 = vpack.c.bf16 %v1578_v14, %v1573_v12  ;;  %v180_v19 = vld [vmem:[#allocation2] sm:$0xff]  ;;  %v1591_v20 = vld [vmem:[%s1535_s3 + $0x70] sm:$0xff]  ;;  %p1292_p4 = scmp.ne.s32.totalorder %s1773_s27, %s1291_s6  ;;  %s1370_s7 = smov [#allocation7]  }
  0x5d   : > { %1143 = vmatprep.subr.bf16.mxu1 %v1142_v9  ;;  %v1146_v18 = vpack.c.bf16 %v1584_v16, %v1581_v15  ;;  %v1594_v21 = vld [vmem:[%s1535_s3 + $0x88] sm:$0xff]  ;;  %1139 = vmatprep.subr.bf16.mxu0 %v1138_v13  ;;  %v1602_v24 = vld [vmem:[%s1535_s3 + $0x80] sm:$0xff]  ;;  %v1611_v27 = vld [vmem:[%s1535_s3 + $0x78] sm:$0xff]  ;;  %s1295_s13 = sshll.u32 %s1370_s7, 4  ;;  %s1296_s13 = int_to_ptr.vmem [resolvable:$false] %s1295_s13 }
  0x5e   : > { %1145 = vmatpush3.bf16.msra.mxu1 %v1142_v9  ;;  %v1158_v22 = vpack.c.bf16 %v1594_v21, %v1591_v20  ;;  %v1599_v23 = vld [vmem:[%s1535_s3 + $0x68] sm:$0xff]  ;;  %1114 = vmatprep.mubr.msk.f32.mxu1 %vm198_vm0, %v180_v19  ;;  %v1608_v26 = vld [vmem:[%s1535_s3 + $0x60] sm:$0xff]  ;;  %v1614_v28 = vld [vmem:[%s1535_s3 + $0x98] sm:$0xff]  ;;  %p1293_p6 = pnand %p1292_p4, %p1479_p12  ;;  %s1297_s18 = scalar_lea.vmem %s1296_s13, 256 }
  0x5f   : > { %1147 = vmatprep.subr.bf16.mxu1 %v1146_v18  ;;  %v1150_v25 = vpack.c.bf16 %v1602_v24, %v1599_v23  ;;  %v1617_v29 = vld [vmem:[%s1535_s3 + $0xb0] sm:$0xff]  ;;  %v1620_v30 = vld [vmem:[%s1535_s3 + $0xa0] sm:$0xff]  ;;  %v181_v31 = vld [vmem:[#allocation2 + $0x8] sm:$0xff]  ;;  %v1152_v32 = vpack.c.bf16 %v1611_v27, %v1608_v26  ;;  %p1298_p10 = scmp.lt.s32.totalorder %s1773_s27, %s1296_s13  ;;  %p1299_p13 = scmp.lt.s32.totalorder %s1297_s18, %s1291_s6 }
  0x60   : > { %1141 = vmatpush1.bf16.msra.mxu0 %v1140_v17  ;;  %v1625_v33 = vld [vmem:[%s1535_s3 + $0xb8] sm:$0xff]  ;;  %v1154_v34 = vpack.c.bf16 %v1617_v29, %v1614_v28  ;;  %v1630_v35 = vld [vmem:[%s1535_s3 + $0x90] sm:$0xff]  ;;  %v1633_v36 = vld [vmem:[%s1535_s3 + $0xa8] sm:$0xff]  ;;  %p1294_p8 = pneg %p1293_p6 }
  0x61   : > { %1159 = vmatprep.subr.bf16.mxu0 %v1158_v22  ;;  %v182_v37 = vld [vmem:[#allocation2 + $0x10] sm:$0xff]  ;;  %v1162_v38 = vpack.c.bf16 %v1625_v33, %v1620_v30  ;;  %v183_v39 = vld [vmem:[#allocation2 + $0x18] sm:$0xff]  ;;  %v1156_v40 = vpack.c.bf16 %v1633_v36, %v1630_v35  ;;  %p1300_p3 = por %p1299_p13, %p1298_p10 }
  0x62   : > { %1149 = vmatpush3.bf16.msra.mxu1 %v1146_v18 }
  0x63   : > { %1151 = vmatprep.subr.bf16.mxu1 %v1150_v25  ;;  %1047 = vmatmul.mubr.msk.f32.vlgmr.msra.gmra.mrb[0].mxu0 %vm198_vm0, %v180_v19  ;;  %p1301_p7 = pnand %p1300_p3, %p1294_p8 }
  0x64   : > { %1161 = vmatpush3.bf16.msra.mxu0 %v1158_v22  ;;  %281 = vmatprep.mubr.f32.mxu0 %v1369_v0 }
  0x65   : > { %1115 = vmatmul.mubr.msk.f32.vlgmr.msra.gmra.mrb[0].mxu1 %vm198_vm0, %v181_v31  ;;  %1163 = vmatprep.subr.bf16.mxu0 %v1162_v38 }
  0x66   : > { %1153 = vmatpush1.bf16.msra.mxu1 %v1152_v32  ;;  %1117 = vmatprep.mubr.msk.f32.mxu1 %vm198_vm0, %v182_v37 }
  0x67   : > { %1155 = vmatprep.subr.bf16.mxu1 %v1154_v34  ;;  %1048 = vmatmul.mubr.msk.f32.gmra.mrb[2].mxu0 %vm198_vm0, %v181_v31 }
  0x68   : > { %287 = vmatprep.mubr.f32.mxu0 %v1369_v0  ;;  %1165 = vmatpush3.bf16.msra.mxu0 %v1162_v38 }
  0x69   : > { %1118 = vmatmul.mubr.msk.f32.gmra.mrb[2].mxu1 %vm198_vm0, %v183_v39 }
  0x6a   : > { %1157 = vmatpush1.bf16.msra.mxu1 %v1156_v40  ;;  %646 = vmatprep.mubr.f32.mxu1 %v1369_v0 }
  0x6b   : > { %1049 = vmatmul.mubr.msk.f32.gmra.mrb[4].mxu0 %vm198_vm0, %v182_v37 }
  0x6c   : > { %293 = vmatprep.mubr.f32.mxu0 %v1369_v0 }
  0x6d   : > { %1071 = vmatmul.mubr.msk.f32.vlgmr.msra.gmra.mrb[4].mxu1 %vm198_vm0, %v180_v19 }
  0x6e   : > { %652 = vmatprep.mubr.f32.mxu1 %v1369_v0 }
  0x6f   : > { %1050 = vmatmul.mubr.msk.f32.gmra.mrb[6].mxu0 %vm198_vm0, %v183_v39 }
  0x70   : > { %1128 = vmatprep.mubr.msk.f32.mxu0 %vm198_vm0, %v180_v19 }
  0x71   : > { %1072 = vmatmul.mubr.msk.f32.gmra.mrb[6].mxu1 %vm198_vm0, %v181_v31 }
  0x72   : > { %658 = vmatprep.mubr.f32.mxu1 %v1369_v0 }
  0x73   : > { %1129 = vmatmul.mubr.msk.f32.vlgmr.msra.gmra.mrb[8].mxu0 %vm198_vm0, %v181_v31 }
  0x74   : > { %1131 = vmatprep.mubr.msk.f32.mxu0 %vm198_vm0, %v182_v37 }
  0x75   : > { %1073 = vmatmul.mubr.msk.f32.gmra.mrb[8].mxu1 %vm198_vm0, %v182_v37 }
  0x76   : > { %664 = vmatprep.mubr.f32.mxu1 %v1369_v0 }
  0x77   : > { %1132 = vmatmul.mubr.msk.f32.gmra.mrb[10].mxu0 %vm198_vm0, %v183_v39 }
  0x79   : > { %1074 = vmatmul.mubr.msk.f32.gmra.mrb[10].mxu1 %vm198_vm0, %v183_v39 }
 0x136   : > { %v277_v41 = vpop.f32.mrb[0].mxu0 }
 0x137   : > { %v385_v42 = vmul.f32 %v277_v41, %v1549_v3  ;;  %v279_v43 = vpop.f32.mrb[1].mxu0 }
 0x138   : > { %v1116_v44 = vpop.f32.mrb[0].mxu1  ;;  %v386_v45 = vmul.f32 %v279_v43, %v1543_v1 }
 0x139   : > { %v366_v46 = vpop.f32.mrb[1].mxu1  ;;  %v390_v53 = vmul.f32 %v1116_v44, %v1560_v7 }
 0x13a   : > { %v387_v47 = vmul.f32 %v366_v46, %v1557_v6  ;;  %v397_v48 = vadd.f32 %v386_v45, %v385_v42  ;;  %v283_v49 = vpop.f32.mrb[2].mxu0 }
 0x13b   : > { %v388_v50 = vmul.f32 %v283_v49, %v1554_v5  ;;  %v285_v51 = vpop.f32.mrb[3].mxu0 }
 0x13c   : > { %v1119_v52 = vpop.f32.mrb[2].mxu1  ;;  %v389_v54 = vmul.f32 %v285_v51, %v1546_v2  ;;  %v1667_v55 = vadd.f32 %v397_v48, %v387_v47 }
 0x13d   : > { %v376_v56 = vpop.f32.mrb[3].mxu1  ;;  %v396_v40 = vmul.f32 %v1119_v52, %v1584_v16 }
 0x13e   : > { %v398_v57 = vadd.f32 %v389_v54, %v388_v50  ;;  %405 = vmax.xlane.f32.xlu0 %v1667_v55  ;;  %v289_v58 = vpop.f32.mrb[4].mxu0  ;;  %v393_v63 = vmul.f32 %v376_v56, %v1581_v15 }
 0x13f   : > { %v391_v59 = vmul.f32 %v289_v58, %v1573_v12  ;;  %v291_v60 = vpop.f32.mrb[5].mxu0 }
 0x140   : > { %v648_v61 = vpop.f32.mrb[4].mxu1  ;;  %v392_v62 = vmul.f32 %v291_v60, %v1567_v10  ;;  %v402_v9 = vadd.f32 %v398_v57, %v390_v53 }
 0x141   : > { %v756_v4 = vmul.f32 %v1608_v26, %v648_v61  ;;  %v650_v8 = vpop.f32.mrb[5].mxu1 }
 0x142   : > { %v757_v13 = vmul.f32 %v1599_v23, %v650_v8  ;;  %v399_v17 = vadd.f32 %v392_v62, %v391_v59  ;;  %407 = vmax.xlane.f32.xlu1 %v402_v9  ;;  %v295_v18 = vpop.f32.mrb[6].mxu0 }
 0x143   : > { %v394_v22 = vmul.f32 %v295_v18, %v1578_v14  ;;  %v297_v25 = vpop.f32.mrb[7].mxu0 }
 0x144   : > { %v768_v19 = vadd.f32 %v757_v13, %v756_v4  ;;  %v654_v31 = vpop.f32.mrb[6].mxu1  ;;  %v395_v32 = vmul.f32 %v297_v25, %v1570_v11  ;;  %v403_v38 = vadd.f32 %v399_v17, %v393_v63  ;;  %v184_v17 = vlaneseq }
 0x145   : > { %v759_v34 = vmul.f32 %v1611_v27, %v654_v31  ;;  %v656_v37 = vpop.f32.mrb[7].mxu1 }
 0x146   : > { %v760_v39 = vmul.f32 %v1602_v24, %v656_v37  ;;  %v400_v41 = vadd.f32 %v395_v32, %v394_v22  ;;  %v1130_v42 = vpop.f32.mrb[8].mxu0  ;;  %v1688_v18 = vand.u32 127, %v184_v17 }
 0x147   : > { %v761_v44 = vmul.f32 %v1130_v42, %v1594_v21  ;;  %v737_v45 = vpop.f32.mrb[9].mxu0 }
 0x148   : > { %v769_v43 = vadd.f32 %v760_v39, %v759_v34  ;;  %v660_v46 = vpop.f32.mrb[8].mxu1  ;;  %v758_v47 = vmul.f32 %v1591_v20, %v737_v45  ;;  %v404_v50 = vadd.f32 %v400_v41, %v396_v40 }
 0x149   : > { %v762_v48 = vmul.f32 %v1630_v35, %v660_v46  ;;  %v662_v49 = vpop.f32.mrb[9].mxu1 }
 0x14a   : > { %v763_v51 = vmul.f32 %v1614_v28, %v662_v49  ;;  %v773_v53 = vadd.f32 %v769_v43, %v761_v44  ;;  %v1133_v54 = vpop.f32.mrb[10].mxu0  ;;  %v772_v56 = vadd.f32 %v768_v19, %v758_v47 }
 0x14b   : > { %v747_v52 = vpop.f32.mrb[11].mxu0  ;;  %v767_v62 = vmul.f32 %v1133_v54, %v1625_v33 }
 0x14c   : > { %v770_v57 = vadd.f32 %v763_v51, %v762_v48  ;;  %778 = vmax.xlane.f32.xlu1 %v773_v53  ;;  %v666_v58 = vpop.f32.mrb[10].mxu1  ;;  %v764_v59 = vmul.f32 %v1620_v30, %v747_v52  ;;  %776 = vmax.xlane.f32.xlu0 %v772_v56 }
 0x14d   : > { %v765_v60 = vmul.f32 %v1633_v36, %v666_v58  ;;  %v668_v61 = vpop.f32.mrb[11].mxu1 }
 0x14e   : > { %v766_v63 = vmul.f32 %v1617_v29, %v668_v61  ;;  %v774_v4 = vadd.f32 %v770_v57, %v764_v59 }
 0x150   : > { %v771_v8 = vadd.f32 %v766_v63, %v765_v60  ;;  %409 = vmax.xlane.f32.xlu0 %v403_v38  ;;  %780 = vmax.xlane.f32.xlu1 %v774_v4 }
 0x152   : > { %v775_v13 = vadd.f32 %v771_v8, %v767_v62 }
 0x154   : > { %782 = vmax.xlane.f32.xlu1 %v775_v13  ;;  %411 = vmax.xlane.f32.xlu0 %v404_v50 }
 0x1cb   : > { %v406_v19 = vpop.xlane.xlu0 %405 }
 0x1cc   : > { %vm413_vm1 = vcmp.eq.f32.partialorder %v1667_v55, %v406_v19 }
 0x1cd   : > { %v417_v22 = vsel %vm413_vm1, %v1688_v18, 128 }
 0x1ce   : > { %v422_v25 = vshra.s32 %v417_v22, 16  ;;  %v421_v63 = vand.u32 65535, %v417_v22 }
 0x1cf   : > { %v408_v31 = vpop.xlane.xlu1 %407 }
 0x1d0   : > { %vm414_vm2 = vcmp.eq.f32.partialorder %v402_v9, %v408_v31  ;;  %v424_v32 = vcvt.s32.f32 %v422_v25 }
 0x1d1   : > { %v418_v34 = vsel %vm414_vm2, %v1688_v18, 128 }
 0x1d2   : > { %425 = vmin.xlane.f32.xlu0 %v424_v32  ;;  %v436_v37 = vshra.s32 %v418_v34, 16 }
 0x1d4   : > { %v438_v39 = vcvt.s32.f32 %v436_v37 }
 0x1d6   : > { %439 = vmin.xlane.f32.xlu0 %v438_v39 }
 0x1d9   : > { %v779_v40 = vpop.xlane.xlu1 %778  ;;  %v777_v41 = vpop.xlane.xlu0 %776 }
 0x1da   : > { %vm785_vm3 = vcmp.eq.f32.partialorder %v773_v53, %v779_v40  ;;  %vm784_vm4 = vcmp.eq.f32.partialorder %v772_v56, %v777_v41 }
 0x1db   : > { %v789_v42 = vsel %vm785_vm3, %v1688_v18, 128  ;;  %v788_v55 = vsel %vm784_vm4, %v1688_v18, 128 }
 0x1dc   : > { %v807_v43 = vshra.s32 %v789_v42, 16  ;;  %v793_v9 = vshra.s32 %v788_v55, 16  ;;  %v806_v31 = vand.u32 65535, %v789_v42  ;;  %v792_v37 = vand.u32 65535, %v788_v55 }
 0x1dd   : > { %v410_v44 = vpop.xlane.xlu0 %409  ;;  %v781_v45 = vpop.xlane.xlu1 %780 }
 0x1de   : > { %v809_v46 = vcvt.s32.f32 %v807_v43  ;;  %vm415_vm5 = vcmp.eq.f32.partialorder %v403_v38, %v410_v44  ;;  %vm786_vm6 = vcmp.eq.f32.partialorder %v774_v4, %v781_v45  ;;  %v795_v54 = vcvt.s32.f32 %v793_v9 }
 0x1df   : > { %v419_v47 = vsel %vm415_vm5, %v1688_v18, 128  ;;  %v790_v48 = vsel %vm786_vm6, %v1688_v18, 128  ;;  %v435_v4 = vand.u32 65535, %v418_v34  ;;  %v808_v41 = vcvt.s32.f32 %v806_v31 }
 0x1e0   : > { %810 = vmin.xlane.f32.xlu1 %v809_v46  ;;  %v450_v49 = vshra.s32 %v419_v47, 16  ;;  %v821_v57 = vshra.s32 %v790_v48, 16  ;;  %v449_v43 = vand.u32 65535, %v419_v47  ;;  %v820_v34 = vand.u32 65535, %v790_v48 }
 0x1e1   : > { %v783_v51 = vpop.xlane.xlu1 %782  ;;  %v412_v53 = vpop.xlane.xlu0 %411  ;;  %v437_v19 = vcvt.s32.f32 %v435_v4 }
 0x1e2   : > { %vm787_vm7 = vcmp.eq.f32.partialorder %v775_v13, %v783_v51  ;;  %vm416_vm8 = vcmp.eq.f32.partialorder %v404_v50, %v412_v53  ;;  %v452_v56 = vcvt.s32.f32 %v450_v49  ;;  %v823_v59 = vcvt.s32.f32 %v821_v57 }
 0x1e3   : > { %v791_v52 = vsel %vm787_vm7, %v1688_v18, 128  ;;  %v420_v58 = vsel %vm416_vm8, %v1688_v18, 128  ;;  %v423_v13 = vcvt.s32.f32 %v421_v63 }
 0x1e4   : > { %796 = vmin.xlane.f32.xlu1 %v795_v54  ;;  %453 = vmin.xlane.f32.xlu0 %v452_v56  ;;  %v464_v38 = vshra.s32 %v420_v58, 16  ;;  %v835_v60 = vshra.s32 %v791_v52, 16  ;;  %v463_v45 = vand.u32 65535, %v420_v58  ;;  %v834_v55 = vand.u32 65535, %v791_v52 }
 0x1e6   : > { %v466_v61 = vcvt.s32.f32 %v464_v38  ;;  %v837_v62 = vcvt.s32.f32 %v835_v60  ;;  %v465_v48 = vcvt.s32.f32 %v463_v45 }
 0x1e8   : > { %824 = vmin.xlane.f32.xlu1 %v823_v59  ;;  %467 = vmin.xlane.f32.xlu0 %v466_v61 }
 0x1ec   : > { %838 = vmin.xlane.f32.xlu1 %v837_v62 }
 0x25f   : > { %v426_v8 = vpop.xlane.xlu0 %425 }
 0x260   : > { %vm427_vm9 = vcmp.eq.f32.partialorder %v424_v32, %v426_v8  ;;  %v794_v32 = vcvt.s32.f32 %v792_v37  ;;  %v432_v52 = vcvt.f32.s32 %v426_v8 }
 0x261   : > { %v428_v50 = vsel %vm427_vm9, %v423_v13, inf  ;;  %vm525_vm9 = vcmask 7168  }
 0x262   : > { %429 = vmin.xlane.f32.xlu0 %v428_v50  ;;  %v433_v60 = vshll.u32 %v432_v52, 16 }
 0x263   : > { %v440_v17 = vpop.xlane.xlu0 %439 }
 0x264   : > { %vm441_vm10 = vcmp.eq.f32.partialorder %v438_v39, %v440_v17  ;;  %v451_v39 = vcvt.s32.f32 %v449_v43  ;;  %v446_v63 = vcvt.f32.s32 %v440_v17 }
 0x265   : > { %v442_v25 = vsel %vm441_vm10, %v437_v19, inf  ;;  %vm530_vm10 = vcmask 15360  }
 0x266   : > { %443 = vmin.xlane.f32.xlu0 %v442_v25  ;;  %v447_v50 = vshll.u32 %v446_v63, 16 }
 0x26d   : > { %v1699_v40 = vpop.xlane.xlu1 %810 }
 0x26e   : > { %vm812_vm11 = vcmp.eq.f32.partialorder %v809_v46, %v1699_v40  ;;  %v822_v46 = vcvt.s32.f32 %v820_v34  ;;  %v817_v34 = vcvt.f32.s32 %v1699_v40 }
 0x26f   : > { %v813_v22 = vsel %vm812_vm11, %v808_v41, inf  ;;  %vm567_vm11 = vcmask 256000  }
 0x270   : > { %814 = vmin.xlane.f32.xlu1 %v813_v22 }
 0x271   : > { %v1702_v44 = vpop.xlane.xlu1 %796  ;;  %v454_v9 = vpop.xlane.xlu0 %453 }
 0x272   : > { %vm798_vm12 = vcmp.eq.f32.partialorder %v795_v54, %v1702_v44  ;;  %vm455_vm13 = vcmp.eq.f32.partialorder %v452_v56, %v454_v9  ;;  %v836_v54 = vcvt.s32.f32 %v834_v55  ;;  %v460_v41 = vcvt.f32.s32 %v454_v9 }
 0x273   : > { %v799_v49 = vsel %vm798_vm12, %v794_v32, inf  ;;  %v456_v42 = vsel %vm455_vm13, %v451_v39, inf  ;;  %v818_v55 = vshll.u32 %v817_v34, 16 }
 0x274   : > { %800 = vmin.xlane.f32.xlu1 %v799_v49  ;;  %457 = vmin.xlane.f32.xlu0 %v456_v42  ;;  %v461_v39 = vshll.u32 %v460_v41, 16  ;;  %v803_v42 = vcvt.f32.s32 %v1702_v44 }
 0x275   : > { %v1705_v51 = vpop.xlane.xlu1 %824  ;;  %v468_v47 = vpop.xlane.xlu0 %467 }
 0x276   : > { %vm826_vm14 = vcmp.eq.f32.partialorder %v823_v59, %v1705_v51  ;;  %vm469_vm15 = vcmp.eq.f32.partialorder %v466_v61, %v468_v47 }
 0x277   : > { %v827_v53 = vsel %vm826_vm14, %v822_v46, inf  ;;  %v470_v57 = vsel %vm469_vm15, %v465_v48, inf }
 0x278   : > { %828 = vmin.xlane.f32.xlu1 %v827_v53  ;;  %471 = vmin.xlane.f32.xlu0 %v470_v57 }
 0x279   : > { %v1708_v58 = vpop.xlane.xlu1 %838 }
 0x27a   : > { %vm840_vm0 = vcmp.eq.f32.partialorder %v837_v62, %v1708_v58 }
 0x27b   : > { %v841_v56 = vsel %vm840_vm0, %v836_v54, inf  ;;  %v831_v54 = vcvt.f32.s32 %v1705_v51 }
 0x27c   : > { %842 = vmin.xlane.f32.xlu1 %v841_v56 }
 0x27d   : > { %v832_v63 = vshll.u32 %v831_v54, 16 }
 0x2ef   : > { %v430_v38 = vpop.xlane.xlu0 %429 }
 0x2f0   : > { %v431_v4 = vcvt.f32.s32 %v430_v38 }
 0x2f2   : > { %v434_v13 = vadd.s32 %v433_v60, %v431_v4 }
 0x2f3   : > { %v444_v59 = vpop.xlane.xlu0 %443 }
 0x2f4   : > { %vm477_vm1 = vcmp.eq.s32.totalorder %v1688_v18, %v434_v13  ;;  %v445_v61 = vcvt.f32.s32 %v444_v59  ;;  %v845_v59 = vcvt.f32.s32 %v1708_v58 }
 0x2f5   : > { %v1055_v19 = vsel %vm477_vm1, 1.0, %v1369_v0 }
 0x2f6   : > { %v448_v25 = vadd.s32 %v447_v50, %v445_v61  ;;  %v489_v31 = vmul.f32 %v1055_v19, %v1549_v3  ;;  %v501_v8 = vmul.f32 %v1055_v19, %v1543_v1  ;;  %v513_v43 = vmul.f32 %v1055_v19, %v1557_v6 }
 0x2f7   : > { %v474_v3 = vcvt.f32.s32 %v468_v47  ;;  %v804_v47 = vshll.u32 %v803_v42, 16 }
 0x2f8   : > { %vm478_vm2 = vcmp.eq.s32.totalorder %v1688_v18, %v448_v25  ;;  %493 = vadd.xlane.f32.xlu0 %v489_v31 }
 0x2f9   : > { %v1056_v62 = vsel %vm478_vm2, 1.0, %v1369_v0  ;;  %v475_v6 = vshll.u32 %v474_v3, 16 }
 0x2fa   : > { %v490_v17 = vmul.f32 %v1056_v62, %v1554_v5  ;;  %v502_v22 = vmul.f32 %v1056_v62, %v1546_v2  ;;  %v514_v5 = vmul.f32 %v1056_v62, %v1560_v7 }
 0x2fc   : > { %505 = vadd.xlane.f32.xlu0 %v501_v8  ;;  %495 = vadd.xlane.f32.xlu1 %v490_v17 }
 0x2fd   : > { %v815_v37 = vpop.xlane.xlu1 %814 }
 0x2fe   : > { %v816_v49 = vcvt.f32.s32 %v815_v37 }
 0x300   : > { %517 = vadd.xlane.f32.xlu0 %v513_v43  ;;  %507 = vadd.xlane.f32.xlu1 %v502_v22  ;;  %v819_v2 = vadd.s32 %v818_v55, %v816_v49 }
 0x301   : > { %v801_v32 = vpop.xlane.xlu1 %800  ;;  %v458_v45 = vpop.xlane.xlu0 %457 }
 0x302   : > { %v459_v1 = vcvt.f32.s32 %v458_v45  ;;  %v802_v48 = vcvt.f32.s32 %v801_v32  ;;  %vm849_vm4 = vcmp.eq.s32.totalorder %v1688_v18, %v819_v2 }
 0x303   : > { %v1080_v13 = vsel %vm849_vm4, 1.0, %v1369_v0 }
 0x304   : > { %v462_v9 = vadd.s32 %v461_v39, %v459_v1  ;;  %519 = vadd.xlane.f32.xlu0 %v514_v5  ;;  %v805_v52 = vadd.s32 %v804_v47, %v802_v48  ;;  %v861_v50 = vmul.f32 %v1080_v13, %v1611_v27  ;;  %v873_v31 = vmul.f32 %v1080_v13, %v1602_v24 }
 0x305   : > { %v472_v46 = vpop.xlane.xlu0 %471  ;;  %v829_v53 = vpop.xlane.xlu1 %828 }
 0x306   : > { %vm479_vm3 = vcmp.eq.s32.totalorder %v1688_v18, %v462_v9  ;;  %v473_v40 = vcvt.f32.s32 %v472_v46  ;;  %v830_v38 = vcvt.f32.s32 %v829_v53  ;;  %vm848_vm6 = vcmp.eq.s32.totalorder %v1688_v18, %v805_v52 }
 0x307   : > { %v1057_v57 = vsel %vm479_vm3, 1.0, %v1369_v0  ;;  %v1079_v19 = vsel %vm848_vm6, 1.0, %v1369_v0 }
 0x308   : > { %v476_v56 = vadd.s32 %v475_v6, %v473_v40  ;;  %v515_v7 = vmul.f32 %v1057_v57, %v1581_v15  ;;  %v491_v44 = vmul.f32 %v1057_v57, %v1573_v12  ;;  %v503_v4 = vmul.f32 %v1057_v57, %v1567_v10 }
 0x309   : > { %v833_v12 = vadd.s32 %v832_v63, %v830_v38  ;;  %v843_v15 = vpop.xlane.xlu1 %842  ;;  %v860_v25 = vmul.f32 %v1079_v19, %v1608_v26  ;;  %v872_v17 = vmul.f32 %v1079_v19, %v1599_v23  ;;  %v884_v37 = vmul.f32 %v1079_v19, %v1591_v20 }
 0x30a   : > { %vm480_vm5 = vcmp.eq.s32.totalorder %v1688_v18, %v476_v56  ;;  %521 = vadd.xlane.f32.xlu1 %v515_v7  ;;  %497 = vadd.xlane.f32.xlu0 %v491_v44  ;;  %v844_v10 = vcvt.f32.s32 %v843_v15 }
 0x30b   : > { %v1058_v60 = vsel %vm480_vm5, 1.0, %v1369_v0  ;;  %vm850_vm7 = vcmp.eq.s32.totalorder %v1688_v18, %v833_v12 }
 0x30c   : > { %v492_v51 = vmul.f32 %v1058_v60, %v1578_v14  ;;  %v504_v61 = vmul.f32 %v1058_v60, %v1570_v11  ;;  %v846_v14 = vshll.u32 %v845_v59, 16  ;;  %v1081_v62 = vsel %vm850_vm7, 1.0, %v1369_v0 }
 0x30d   : > { %v874_v27 = vmul.f32 %v1081_v62, %v1614_v28  ;;  %v885_v11 = vmul.f32 %v1080_v13, %v1594_v21  ;;  %v886_v58 = vmul.f32 %v1081_v62, %v1620_v30  ;;  %v516_v21 = vmul.f32 %v1058_v60, %v1584_v16 }
 0x30e   : > { %509 = vadd.xlane.f32.xlu0 %v503_v4  ;;  %499 = vadd.xlane.f32.xlu1 %v492_v51  ;;  %v847_v8 = vadd.s32 %v846_v14, %v844_v10  ;;  %v862_v28 = vmul.f32 %v1081_v62, %v1630_v35 }
 0x310   : > { %vm851_vm8 = vcmp.eq.s32.totalorder %v1688_v18, %v847_v8 }
 0x311   : > { %v1082_v26 = vsel %vm851_vm8, 1.0, %v1369_v0 }
 0x312   : > { %866 = vadd.xlane.f32.xlu0 %v861_v50  ;;  %511 = vadd.xlane.f32.xlu1 %v504_v61  ;;  %v863_v24 = vmul.f32 %v1082_v26, %v1633_v36  ;;  %v875_v30 = vmul.f32 %v1082_v26, %v1617_v29  ;;  %v887_v23 = vmul.f32 %v1082_v26, %v1625_v33 }
 0x316   : > { %864 = vadd.xlane.f32.xlu0 %v860_v25  ;;  %878 = vadd.xlane.f32.xlu1 %v873_v31 }
 0x31a   : > { %880 = vadd.xlane.f32.xlu0 %v874_v27  ;;  %890 = vadd.xlane.f32.xlu1 %v885_v11 }
 0x31e   : > { %892 = vadd.xlane.f32.xlu0 %v886_v58  ;;  %876 = vadd.xlane.f32.xlu1 %v872_v17 }
 0x322   : > { %870 = vadd.xlane.f32.xlu0 %v863_v24  ;;  %888 = vadd.xlane.f32.xlu1 %v884_v37 }
 0x326   : > { %523 = vadd.xlane.f32.xlu0 %v516_v21  ;;  %868 = vadd.xlane.f32.xlu1 %v862_v28 }
 0x32a   : > { %882 = vadd.xlane.f32.xlu1 %v875_v30 }
 0x32e   : > { %894 = vadd.xlane.f32.xlu1 %v887_v23 }
 0x385   : > { %v494_v0 = vpop.xlane.xlu0 %493 }
 0x389   : > { %v496_v18 = vpop.xlane.xlu1 %495  ;;  %v506_v41 = vpop.xlane.xlu0 %505 }
 0x38a   : > { %v526_v20 = vsel %vm525_vm9, %v494_v0, %v506_v41 }
 0x38d   : > { %v518_v36 = vpop.xlane.xlu0 %517  ;;  %v508_v43 = vpop.xlane.xlu1 %507 }
 0x38e   : > { %v531_v16 = vsel %vm530_vm10, %v526_v20, %v518_v36  ;;  %v527_v35 = vsel %vm525_vm9, %v496_v18, %v508_v43 }
 0x38f   : > { %535 = vxpose.xlu0.b32.start [1/4] (short) (narrow) %v531_v16, 8 }
 0x391   : > { %v520_v22 = vpop.xlane.xlu0 %519 }
 0x392   : > { %v532_v29 = vsel %vm530_vm10, %v527_v35, %v520_v22 }
 0x393   : > { %536 = vxpose.xlu0.b32.cont [2/4] (short) (narrow) %v532_v29, 8 }
 0x397   : > { %v522_v33 = vpop.xlane.xlu1 %521  ;;  %v498_v34 = vpop.xlane.xlu0 %497 }
 0x39b   : > { %v500_v3 = vpop.xlane.xlu1 %499  ;;  %v510_v32 = vpop.xlane.xlu0 %509 }
 0x39c   : > { %v528_v45 = vsel %vm525_vm9, %v498_v34, %v510_v32 }
 0x39d   : > { %v533_v39 = vsel %vm530_vm10, %v528_v45, %v522_v33 }
 0x39e   : > { %537 = vxpose.xlu0.b32.cont [3/4] (short) (narrow) %v533_v39, 8 }
 0x39f   : > { %v512_v49 = vpop.xlane.xlu1 %511  ;;  %v867_v1 = vpop.xlane.xlu0 %866 }
 0x3a0   : > { %v529_v53 = vsel %vm525_vm9, %v500_v3, %v512_v49 }
 0x3a3   : > { %v879_v5 = vpop.xlane.xlu1 %878  ;;  %v865_v42 = vpop.xlane.xlu0 %864 }
 0x3a4   : > { %v897_v57 = vsel %vm525_vm9, %v867_v1, %v879_v5 }
 0x3a7   : > { %v891_v55 = vpop.xlane.xlu1 %890  ;;  %v881_v9 = vpop.xlane.xlu0 %880 }
 0x3a8   : > { %v901_v7 = vsel %vm530_vm10, %v897_v57, %v891_v55 }
 0x3ab   : > { %v877_v6 = vpop.xlane.xlu1 %876  ;;  %v893_v46 = vpop.xlane.xlu0 %892 }
 0x3ac   : > { %v896_v2 = vsel %vm525_vm9, %v865_v42, %v877_v6 }
 0x3af   : > { %v889_v48 = vpop.xlane.xlu1 %888  ;;  %v871_v40 = vpop.xlane.xlu0 %870 }
 0x3b0   : > { %v900_v47 = vsel %vm530_vm10, %v896_v2, %v889_v48 }
 0x3b1   : > { %904 = vxpose.xlu1.b32.start [1/4] (short) (narrow) %v900_v47, 8 }
 0x3b3   : > { %v869_v54 = vpop.xlane.xlu1 %868  ;;  %v524_v56 = vpop.xlane.xlu0 %523 }
 0x3b4   : > { %v534_v44 = vsel %vm530_vm10, %v529_v53, %v524_v56  ;;  %v898_v52 = vsel %vm525_vm9, %v869_v54, %v881_v9 }
 0x3b5   : > { %905 = vxpose.xlu1.b32.cont [2/4] (short) (narrow) %v901_v7, 8  ;;  %538 = vxpose.xlu0.b32.end [4/4] (short) (narrow) %v534_v44, 8  ;;  %v902_v60 = vsel %vm530_vm10, %v898_v52, %v893_v46 }
 0x3b7   : > { %v883_v38 = vpop.xlane.xlu1 %882 }
 0x3b8   : > { %v899_v63 = vsel %vm525_vm9, %v871_v40, %v883_v38 }
 0x3b9   : > { %906 = vxpose.xlu1.b32.cont [3/4] (short) (narrow) %v902_v60, 8 }
 0x3bb   : > { %v895_v4 = vpop.xlane.xlu1 %894 }
 0x3bc   : > { %v903_v51 = vsel %vm530_vm10, %v899_v63, %v895_v4 }
 0x3bd   : > { %907 = vxpose.xlu1.b32.end [4/4] (short) (narrow) %v903_v51, 8 }
 0x429   : > { %v551_v13 = vpop.trf.xlu0 }
 0x42a   : > { %568 = vst.msk [vmem:[%s177_s17] sm:$0x7] %vm567_vm11, %v551_v13 }
 0x431   : > { %v920_v12 = vpop.trf.xlu1 }
 0x432   : > { %1083 = vst.msk [vmem:[%s177_s17 + $0x4] sm:$0x7] %vm567_vm11, %v920_v12 }
 0x433   : > { %1304 = shalt.err (!%p1301_p7)
}
 0x434   : > { %s1305_s24 = scalar_lea.hbm %s1778_s4, 128  ;;  %s1309_s26 = scalar_lea.hbm %s1824_s2, 256 }
 0x435   : > { %p1306_p9 = scmp.ne.s32.totalorder %s1778_s4, %s1305_s24  ;;  %p1310_p5 = scmp.lt.u32.totalorder %s1778_s4, %s1824_s2 }
 0x436   : > { %p1311_p1 = scmp.lt.u32.totalorder %s1309_s26, %s1305_s24  ;;  %p1313_p4 = scmp.lt.u32.totalorder %s1305_s24, %s1778_s4 }
 0x437   : > { %p1307_p2 = pnand %p1306_p9, %p1479_p12 }
 0x438   : > { %p1312_p11 = por %p1311_p1, %p1310_p5 }
 0x439   : > { %p1308_p0 = pneg %p1307_p2 }
 0x43a   : > { %p1314_p6 = por %p1313_p4, %p1312_p11 }
 0x43c   : > { %p1315_p8 = pnand %p1314_p6, %p1308_p0 }
 0x43e   : > { %1318 = shalt.err (!%p1315_p8)
}
 0x43f   : > { %s1371_s3 = smov 64   ;;  %s1372_s15 = smov 4  }
 0x440   : > { %1175 = dma.vmem_to_hbm [thread:$0]  (%p1479_p12), %s1773_s27, 128, %s1778_s4, %s939_s5, %s1371_s3, %s1371_s3, %s1372_s15  }
 0x441 PF: > { %s967_s17 = sand.u32 1, %s1349_s9   ;;  %p1839_p10 = scmp.ne.s32.totalorder %s1829_s16, 0 }
 0x442   : > { %p1840_p13 = scmp.ge.s32.totalorder %s1361_s12, 2  ;;  %s968_s19 = scalar_lea.sflag [#allocation4], %s967_s17 }
 0x444   : > { %p1186_p3 = pnand %p1840_p13, %p1839_p10 }
 0x446   : > { %1344 = dma.done.wait (!%p1186_p3), %s968_s19, 128  }
 0x447   : > { %1346 = vsyncadd (!%p1186_p3), %s968_s19, 4294967168  ;;  %p16_p7 = scmp.ge.s32.totalorder %s1444_s21, 4   ;;  %s1841_s9 = smov %s1353_s10 }
 0x448   : > { %s1842_s10 = smov %s1357_s11  ;;  %s1843_s11 = smov %s1475_s8 }
 0x449   : > { %s1844_s12 = smov %s1444_s21  ;;  %18 = sbr.rel (!%p16_p7) target bundleno = 6 (0x6), region = 80 }
 0x450   :  { %973 = vsyncpa [#allocation3], 1 }
 0x451   :  { %975 = vsyncpa [#allocation3 + $0x1], 1 }
 0x452   :  { %976 = vsyncpa [#allocation6], 1 }
 0x453   :  { %978 = vsyncpa [#allocation6 + $0x1], 1 }
 0x454   :  { %979 = vsyncpa [#allocation4], 1 }
 0x455   :  { %981 = vsyncpa [#allocation4 + $0x1], 1 }

</bundles_post_ra>
